<compile_context>
chip_gen: v7x
topology: tpu7x:2x2x1
jax: 0.10.0
libtpu: 0.0.40
codegen_flags: <defaults>
</compile_context>

<pallas_src>
import jax
import jax.numpy as jnp
from jax.experimental import pallas as pl
from jax.experimental.pallas import tpu as pltpu

EPS = 1e-5

# v7x has 64 MiB VMEM per TensorCore -> keep the default batch tile at 32768
# (<= ~48 MiB scoped VMEM incl. double buffers + two live (32, tile) f32
# activations).  On v5e/v6e (128 MiB VMEM) callers may pass tile_n=65536.
DEFAULT_TILE_N = 32768


def _round_up(n, m):
    return (n + m - 1) // m * m


def mlp_kernel(
    x_ref,                  # (in_features, TILE_N)   batch on lanes
    w0_ref, b0_ref,         # (h0, in_features), (h0, 1)       -- BN folded
    w1_ref, b1_ref,         # (h1, h0), (h1, 1)                -- BN folded
    w2_ref, b2_ref,         # (h2, h1), (h2, 1)                -- BN folded
    w3_ref, b3_ref,         # (n_classes, h2), (n_classes, 1)
    out_ref,                # (n_classes, TILE_N)
):
    f32 = jnp.float32
    x = x_ref[...]
    in_features = x_ref.shape[0]

    # Layer 0: K = in_features is tiny (2), so do unrolled outer-product MACs
    # on the VPU instead of an MXU matmul with K padded 2 -> 128/256.
    if in_features <= 8:
        w0 = w0_ref[...]
        h = b0_ref[...].astype(f32)                       # (h0, 1) -> broadcast
        for k in range(in_features):
            h = h + w0[:, k:k + 1].astype(f32) * x[k:k + 1, :].astype(f32)
    else:
        h = jnp.dot(w0_ref[...], x, preferred_element_type=f32) + b0_ref[...]
    h = jnp.maximum(h, 0.0)

    # Hidden layers: (BN-folded) Linear -> ReLU, batch on the MXU's N axis.
    h = jnp.dot(w1_ref[...], h.astype(w1_ref.dtype), preferred_element_type=f32) + b1_ref[...]
    h = jnp.maximum(h, 0.0)
    h = jnp.dot(w2_ref[...], h.astype(w2_ref.dtype), preferred_element_type=f32) + b2_ref[...]
    h = jnp.maximum(h, 0.0)

    # Head (no BN / ReLU); lane-dense store.
    out_ref[...] = (
        jnp.dot(w3_ref[...], h.astype(w3_ref.dtype), preferred_element_type=f32)
        + b3_ref[...]
    ).astype(out_ref.dtype)


def fold_bn_into_linear(params, *, use_bf16=False):
    """params: PyTorch-style flat list
       [w, b, gamma, beta, running_mean, running_var] per hidden layer + [w_head, b_head],
       with w in (out, in) layout and vectors as (out,).
       Returns [(W', b')] x (n_hidden + 1) with eval-mode BatchNorm folded in,
       b' shaped (out, 1).  Weights optionally cast to bf16; biases stay f32."""
    n_hidden = (len(params) - 2) // 6
    wdt = jnp.bfloat16 if use_bf16 else jnp.float32
    folded = []
    for li in range(n_hidden):
        w, b, g, be, m, v = params[6 * li:6 * li + 6]
        scale = g * jax.lax.rsqrt(v + EPS)                       # (out,)
        w_f = (w * scale[:, None]).astype(wdt)                   # row-wise scale
        b_f = ((b - m) * scale + be).reshape(-1, 1).astype(jnp.float32)
        folded.append((w_f, b_f))
    w_head, b_head = params[-2], params[-1]
    folded.append((w_head.astype(wdt), b_head.reshape(-1, 1).astype(jnp.float32)))
    return folded


def testnet_linear_forward_fm(x_fm, params, *, tile_n=None, use_bf16=False):
    """Optimized entry point.  x_fm: (in_features, N) -- batch on the lane axis.
    Returns (n_classes, N) f32.  No transpose/zero-fill round-trips over HBM;
    the lane axis is padded only when N is not already tile-aligned."""
    in_features, n = x_fm.shape
    folded = fold_bn_into_linear(params, use_bf16=use_bf16)
    assert len(folded) == 4, "kernel is specialized to 3 hidden layers + head"
    (w0, b0), (w1, b1), (w2, b2), (w3, b3) = folded
    n_classes = w3.shape[0]
    h_max = max(w.shape[0] for w, _ in folded)

    if tile_n is None:
        tile_n = DEFAULT_TILE_N

    # Big tiles amortize the ~0.35 us per-grid-step overhead; keep >= 2 grid
    # steps when the batch allows it so the "parallel" axis can shard across
    # both TensorCores on v7x (single-TC v5e/v6e are unaffected).
    n_pad = _round_up(max(n, 1), 128)
    tile = max(128, min(tile_n, _round_up((n_pad + 1) // 2, 128)))
    n_pad = _round_up(n_pad, tile)
    num_tiles = n_pad // tile

    cdt = jnp.bfloat16 if use_bf16 else jnp.float32
    x_fm = x_fm.astype(cdt)
    if n_pad != n:  # Python-level branch: aligned N pays nothing here.
        x_fm = jnp.pad(x_fm, ((0, 0), (0, n_pad - n)))

    weight_args = (w0, b0, w1, b1, w2, b2, w3, b3)

    def const_spec(p):
        # VMEM-resident across all grid steps (constant index_map -> no re-DMA).
        return pl.BlockSpec(p.shape, lambda i: (0, 0))

    # VMEM budget: double-buffered x/out blocks + two live hidden activations
    # (f32) + resident weights, with generous headroom; capped below the
    # smallest target's physical VMEM (v7x: 64 MiB per TensorCore).
    w_bytes = sum(int(w.size) * w.dtype.itemsize + 4 * int(b.size) for w, b in folded)
    est = (2 * tile * (in_features + n_classes) * x_fm.dtype.itemsize * 2   # x/out, 2 bufs
           + 4 * tile * h_max * 2                                           # two live h (f32)
           + 2 * w_bytes)
    vmem_cap = 48 * 1024 * 1024 if tile <= 32768 else 96 * 1024 * 1024
    vmem_limit = int(max(16 * 1024 * 1024, min(4 * est, vmem_cap)))

    dims = [in_features] + [w.shape[0] for w, _ in folded]
    flops = 2 * n_pad * sum(a * b for a, b in zip(dims[:-1], dims[1:]))
    bytes_accessed = (int(x_fm.size) * x_fm.dtype.itemsize
                      + 4 * n_classes * n_pad + w_bytes)

    out_fm = pl.pallas_call(
        mlp_kernel,
        out_shape=jax.ShapeDtypeStruct((n_classes, n_pad), jnp.float32),
        grid=(num_tiles,),
        in_specs=[pl.BlockSpec((in_features, tile), lambda i: (0, i))]
                 + [const_spec(p) for p in weight_args],
        out_specs=pl.BlockSpec((n_classes, tile), lambda i: (0, i)),
        compiler_params=pltpu.CompilerParams(
            dimension_semantics=("parallel",),
            vmem_limit_bytes=vmem_limit,
        ),
        cost_estimate=pl.CostEstimate(
            flops=flops, transcendentals=0, bytes_accessed=bytes_accessed),
    )(x_fm, *weight_args)

    return out_fm if n_pad == n else out_fm[:, :n]


def reference_forward(x, params):
    """Pure-JAX reference mirroring TestNetLinear.forward (BN eval semantics,
    unfolded parameters).  x: (N, in_features)."""
    n_hidden = (len(params) - 2) // 6
    h = x
    for li in range(n_hidden):
        w, b, g, be, m, v = params[6 * li:6 * li + 6]
        h = h @ w.T + b
        h = g * (h - m) * jax.lax.rsqrt(v + EPS) + be
        h = jnp.maximum(h, 0.0)
    w_head, b_head = params[-2], params[-1]
    return h @ w_head.T + b_head


def testnet_linear_forward(x, params, *, tile_n=None, use_bf16=False,
                           min_pallas_batch=4096):
    """(N, in_features) -> (N, n_classes) compatibility wrapper.
    Tiny batches skip Pallas entirely (XLA fusion wins; ~4.4 KFLOP/sample).
    Large batches pay one transpose each way -- prefer
    testnet_linear_forward_fm and keep activations feature-major end-to-end."""
    n = x.shape[0]
    if n < min_pallas_batch:
        return reference_forward(x, params)
    return testnet_linear_forward_fm(x.T, params, tile_n=tile_n, use_bf16=use_bf16).T


def init_params(key, in_features=2, layers=(32, 32, 32), n_classes=2):
    """PyTorch-style parameters: Linear weight (out, in), bias (out,),
    BatchNorm gamma/beta/running_mean/running_var as (out,) vectors.
    Running stats are non-trivial so the BN path is actually exercised."""
    dims = [in_features] + list(layers)
    params = []
    keys = jax.random.split(key, 4 * len(layers) + 2)
    ki = 0
    for li in range(len(layers)):
        fan_in, fan_out = dims[li], dims[li + 1]
        bound = 1.0 / jnp.sqrt(jnp.float32(fan_in))
        w = jax.random.uniform(keys[ki], (fan_out, fan_in), jnp.float32, -bound, bound); ki += 1
        b = jax.random.uniform(keys[ki], (fan_out,), jnp.float32, -bound, bound); ki += 1
        gamma = 1.0 + 0.1 * jax.random.normal(keys[ki], (fan_out,), jnp.float32); ki += 1
        beta = 0.1 * jax.random.normal(keys[ki], (fan_out,), jnp.float32); ki += 1
        rmean = 0.05 * jnp.arange(fan_out, dtype=jnp.float32)
        rvar = 1.0 + 0.02 * jnp.arange(fan_out, dtype=jnp.float32)
        params.extend([w, b, gamma, beta, rmean, rvar])
    fan_in = dims[-1]
    bound = 1.0 / jnp.sqrt(jnp.float32(fan_in))
    w_head = jax.random.uniform(keys[ki], (n_classes, fan_in), jnp.float32, -bound, bound); ki += 1
    b_head = jax.random.uniform(keys[ki], (n_classes,), jnp.float32, -bound, bound); ki += 1
    params.extend([w_head, b_head])
    return params


if __name__ == "__main__":
    key = jax.random.PRNGKey(0)
    k_param, k_x = jax.random.split(key)

    in_features, layers, n_classes = 2, (32, 32, 32), 2
    batch = 8

    params = init_params(k_param, in_features, layers, n_classes)
    x = jax.random.normal(k_x, (batch, in_features), jnp.float32)
    ref = reference_forward(x, params)

    # Optimized feature-major path (no wrapper transpose round-trips).
    out_fm = testnet_linear_forward_fm(jnp.asarray(x.T), params)
    out_fm = jax.block_until_ready(out_fm)
    assert out_fm.shape == (n_classes, batch)
    assert jnp.allclose(out_fm.T, ref, atol=1e-4, rtol=1e-4), "fm mismatch vs reference"

    # Compatibility (N, features) wrapper; force the Pallas path so the kernel
    # is exercised through this entry point as well.
    out = testnet_linear_forward(x, params, min_pallas_batch=0)
    out = jax.block_until_ready(out)
    assert out.shape == (batch, n_classes)
    assert jnp.allclose(out, ref, atol=1e-4, rtol=1e-4), "mismatch vs reference"

    print("KERNEL_OK")
</pallas_src>

<mosaic_0001>
module attributes {stable_mosaic.version = 11 : i64} {
  func.func @mlp_kernel(%arg0: i32, %arg1: memref<2x128xf32, #tpu.memory_space<vmem>>, %arg2: memref<32x2xf32, #tpu.memory_space<vmem>>, %arg3: memref<32x1xf32, #tpu.memory_space<vmem>>, %arg4: memref<32x32xf32, #tpu.memory_space<vmem>>, %arg5: memref<32x1xf32, #tpu.memory_space<vmem>>, %arg6: memref<32x32xf32, #tpu.memory_space<vmem>>, %arg7: memref<32x1xf32, #tpu.memory_space<vmem>>, %arg8: memref<2x32xf32, #tpu.memory_space<vmem>>, %arg9: memref<2x1xf32, #tpu.memory_space<vmem>>, %arg10: memref<2x128xf32, #tpu.memory_space<vmem>>) attributes {dimension_semantics = [#tpu.dimension_semantics<parallel>], iteration_bounds = array<i64: 1>, scalar_prefetch = 0 : i64, scratch_operands = 0 : i64, tpu.core_type = #tpu.core_type<tc>, window_params = [{transform_indices = @transform_0, window_bounds = array<i64: 2, 128>}, {pipeline_mode = #tpu.pipeline_mode<synchronous>, transform_indices = @transform_1, window_bounds = array<i64: 32, 2>}, {pipeline_mode = #tpu.pipeline_mode<synchronous>, transform_indices = @transform_2, window_bounds = array<i64: 32, 1>}, {pipeline_mode = #tpu.pipeline_mode<synchronous>, transform_indices = @transform_3, window_bounds = array<i64: 32, 32>}, {pipeline_mode = #tpu.pipeline_mode<synchronous>, transform_indices = @transform_4, window_bounds = array<i64: 32, 1>}, {pipeline_mode = #tpu.pipeline_mode<synchronous>, transform_indices = @transform_5, window_bounds = array<i64: 32, 32>}, {pipeline_mode = #tpu.pipeline_mode<synchronous>, transform_indices = @transform_6, window_bounds = array<i64: 32, 1>}, {pipeline_mode = #tpu.pipeline_mode<synchronous>, transform_indices = @transform_7, window_bounds = array<i64: 2, 32>}, {pipeline_mode = #tpu.pipeline_mode<synchronous>, transform_indices = @transform_8, window_bounds = array<i64: 2, 1>}, {transform_indices = @transform_9, window_bounds = array<i64: 2, 128>}]} {
    %c0 = arith.constant 0 : index
    %c0_0 = arith.constant 0 : index
    %0 = vector.load %arg1[%c0, %c0_0] : memref<2x128xf32, #tpu.memory_space<vmem>>, vector<2x128xf32>
    %c0_1 = arith.constant 0 : index
    %c0_2 = arith.constant 0 : index
    %1 = vector.load %arg2[%c0_1, %c0_2] : memref<32x2xf32, #tpu.memory_space<vmem>>, vector<32x2xf32>
    %c0_3 = arith.constant 0 : index
    %c0_4 = arith.constant 0 : index
    %2 = vector.load %arg3[%c0_3, %c0_4] : memref<32x1xf32, #tpu.memory_space<vmem>>, vector<32x1xf32>
    %3 = vector.extract_strided_slice %1 {offsets = [0, 0], sizes = [32, 1], strides = [1, 1]} : vector<32x2xf32> to vector<32x1xf32>
    %4 = vector.extract_strided_slice %0 {offsets = [0, 0], sizes = [1, 128], strides = [1, 1]} : vector<2x128xf32> to vector<1x128xf32>
    %5 = vector.broadcast %3 : vector<32x1xf32> to vector<32x128xf32>
    %6 = vector.broadcast %4 : vector<1x128xf32> to vector<32x128xf32>
    %7 = arith.mulf %5, %6 : vector<32x128xf32>
    %8 = vector.broadcast %2 : vector<32x1xf32> to vector<32x128xf32>
    %9 = arith.addf %8, %7 : vector<32x128xf32>
    %10 = vector.extract_strided_slice %1 {offsets = [0, 1], sizes = [32, 1], strides = [1, 1]} : vector<32x2xf32> to vector<32x1xf32>
    %11 = vector.extract_strided_slice %0 {offsets = [1, 0], sizes = [1, 128], strides = [1, 1]} : vector<2x128xf32> to vector<1x128xf32>
    %12 = vector.broadcast %10 : vector<32x1xf32> to vector<32x128xf32>
    %13 = vector.broadcast %11 : vector<1x128xf32> to vector<32x128xf32>
    %14 = arith.mulf %12, %13 : vector<32x128xf32>
    %15 = arith.addf %9, %14 : vector<32x128xf32>
    %cst = arith.constant 0.000000e+00 : f32
    %16 = vector.broadcast %cst : f32 to vector<32x128xf32>
    %17 = arith.maximumf %15, %16 : vector<32x128xf32>
    %c0_5 = arith.constant 0 : index
    %c0_6 = arith.constant 0 : index
    %18 = vector.load %arg4[%c0_5, %c0_6] : memref<32x32xf32, #tpu.memory_space<vmem>>, vector<32x32xf32>
    %cst_7 = arith.constant dense<0.000000e+00> : vector<32x128xf32>
    %19 = tpu.matmul %18, %17, %cst_7 {dimension_numbers = #tpu.dot_dimension_numbers<[1], [0], [0], [1], [0, 0, 1, 1], [], []>} : vector<32x32xf32>, vector<32x128xf32>, vector<32x128xf32> -> vector<32x128xf32>
    %c0_8 = arith.constant 0 : index
    %c0_9 = arith.constant 0 : index
    %20 = vector.load %arg5[%c0_8, %c0_9] : memref<32x1xf32, #tpu.memory_space<vmem>>, vector<32x1xf32>
    %21 = vector.broadcast %20 : vector<32x1xf32> to vector<32x128xf32>
    %22 = arith.addf %19, %21 : vector<32x128xf32>
    %cst_10 = arith.constant 0.000000e+00 : f32
    %23 = vector.broadcast %cst_10 : f32 to vector<32x128xf32>
    %24 = arith.maximumf %22, %23 : vector<32x128xf32>
    %c0_11 = arith.constant 0 : index
    %c0_12 = arith.constant 0 : index
    %25 = vector.load %arg6[%c0_11, %c0_12] : memref<32x32xf32, #tpu.memory_space<vmem>>, vector<32x32xf32>
    %cst_13 = arith.constant dense<0.000000e+00> : vector<32x128xf32>
    %26 = tpu.matmul %25, %24, %cst_13 {dimension_numbers = #tpu.dot_dimension_numbers<[1], [0], [0], [1], [0, 0, 1, 1], [], []>} : vector<32x32xf32>, vector<32x128xf32>, vector<32x128xf32> -> vector<32x128xf32>
    %c0_14 = arith.constant 0 : index
    %c0_15 = arith.constant 0 : index
    %27 = vector.load %arg7[%c0_14, %c0_15] : memref<32x1xf32, #tpu.memory_space<vmem>>, vector<32x1xf32>
    %28 = vector.broadcast %27 : vector<32x1xf32> to vector<32x128xf32>
    %29 = arith.addf %26, %28 : vector<32x128xf32>
    %cst_16 = arith.constant 0.000000e+00 : f32
    %30 = vector.broadcast %cst_16 : f32 to vector<32x128xf32>
    %31 = arith.maximumf %29, %30 : vector<32x128xf32>
    %c0_17 = arith.constant 0 : index
    %c0_18 = arith.constant 0 : index
    %32 = vector.load %arg8[%c0_17, %c0_18] : memref<2x32xf32, #tpu.memory_space<vmem>>, vector<2x32xf32>
    %cst_19 = arith.constant dense<0.000000e+00> : vector<2x128xf32>
    %33 = tpu.matmul %32, %31, %cst_19 {dimension_numbers = #tpu.dot_dimension_numbers<[1], [0], [0], [1], [0, 0, 1, 1], [], []>} : vector<2x32xf32>, vector<32x128xf32>, vector<2x128xf32> -> vector<2x128xf32>
    %c0_20 = arith.constant 0 : index
    %c0_21 = arith.constant 0 : index
    %34 = vector.load %arg9[%c0_20, %c0_21] : memref<2x1xf32, #tpu.memory_space<vmem>>, vector<2x1xf32>
    %35 = vector.broadcast %34 : vector<2x1xf32> to vector<2x128xf32>
    %36 = arith.addf %33, %35 : vector<2x128xf32>
    %c0_22 = arith.constant 0 : index
    %c0_23 = arith.constant 0 : index
    %37 = vector.load %arg10[%c0_22, %c0_23] : memref<2x128xf32, #tpu.memory_space<vmem>>, vector<2x128xf32>
    tpu.vector_store %arg10[%c0_22, %c0_23], %36 {strides = array<i32>} : memref<2x128xf32, #tpu.memory_space<vmem>>, vector<2x128xf32>,
    return
  }
  func.func @transform_0(%arg0: i32) -> (i32, i32) {
    %c0_i32 = arith.constant 0 : i32
    %c0_i32_0 = arith.constant 0 : i32
    return %c0_i32, %arg0 : i32, i32
  }
  func.func @transform_1(%arg0: i32) -> (i32, i32) {
    %c0_i32 = arith.constant 0 : i32
    %c0_i32_0 = arith.constant 0 : i32
    %c0_i32_1 = arith.constant 0 : i32
    return %c0_i32, %c0_i32_0 : i32, i32
  }
  func.func @transform_2(%arg0: i32) -> (i32, i32) {
    %c0_i32 = arith.constant 0 : i32
    %c0_i32_0 = arith.constant 0 : i32
    %c0_i32_1 = arith.constant 0 : i32
    return %c0_i32, %c0_i32_0 : i32, i32
  }
  func.func @transform_3(%arg0: i32) -> (i32, i32) {
    %c0_i32 = arith.constant 0 : i32
    %c0_i32_0 = arith.constant 0 : i32
    %c0_i32_1 = arith.constant 0 : i32
    return %c0_i32, %c0_i32_0 : i32, i32
  }
  func.func @transform_4(%arg0: i32) -> (i32, i32) {
    %c0_i32 = arith.constant 0 : i32
    %c0_i32_0 = arith.constant 0 : i32
    %c0_i32_1 = arith.constant 0 : i32
    return %c0_i32, %c0_i32_0 : i32, i32
  }
  func.func @transform_5(%arg0: i32) -> (i32, i32) {
    %c0_i32 = arith.constant 0 : i32
    %c0_i32_0 = arith.constant 0 : i32
    %c0_i32_1 = arith.constant 0 : i32
    return %c0_i32, %c0_i32_0 : i32, i32
  }
  func.func @transform_6(%arg0: i32) -> (i32, i32) {
    %c0_i32 = arith.constant 0 : i32
    %c0_i32_0 = arith.constant 0 : i32
    %c0_i32_1 = arith.constant 0 : i32
    return %c0_i32, %c0_i32_0 : i32, i32
  }
  func.func @transform_7(%arg0: i32) -> (i32, i32) {
    %c0_i32 = arith.constant 0 : i32
    %c0_i32_0 = arith.constant 0 : i32
    %c0_i32_1 = arith.constant 0 : i32
    return %c0_i32, %c0_i32_0 : i32, i32
  }
  func.func @transform_8(%arg0: i32) -> (i32, i32) {
    %c0_i32 = arith.constant 0 : i32
    %c0_i32_0 = arith.constant 0 : i32
    %c0_i32_1 = arith.constant 0 : i32
    return %c0_i32, %c0_i32_0 : i32, i32
  }
  func.func @transform_9(%arg0: i32) -> (i32, i32) {
    %c0_i32 = arith.constant 0 : i32
    %c0_i32_0 = arith.constant 0 : i32
    return %c0_i32, %arg0 : i32, i32
  }
}

</mosaic_0001>

<bundles_post_ra>
// kernel: tpu_custom_call.1
= control target key start
LH: loop header
LB: loop body
LE: loop exit
PB: predicated region body
PF: predicated region fallthrough
CT: control target
= control target key end

     0   :  { %v609_v2 = vmov 0   ;;  %s767_s0 = inlined_call_operand.vmem [shape: f32[2,128], index: 0, kind: input, shape index: {}]   ;;  %s768_s1 = inlined_call_operand.vmem [shape: f32[32,2], index: 1, kind: input, shape index: {}]   ;;  %s769_s2 = inlined_call_operand.vmem [shape: f32[32,1], index: 2, kind: input, shape index: {}]   ;;  %s770_s3 = inlined_call_operand.vmem [shape: f32[32,32], index: 3, kind: input, shape index: {}]   ;;  %s771_s4 = inlined_call_operand.vmem [shape: f32[32,1], index: 4, kind: input, shape index: {}]   ;;  %s772_s5 = inlined_call_operand.vmem [shape: f32[32,32], index: 5, kind: input, shape index: {}]   ;;  %s773_s6 = inlined_call_operand.vmem [shape: f32[32,1], index: 6, kind: input, shape index: {}]   ;;  %s774_s7 = inlined_call_operand.vmem [shape: f32[2,32], index: 7, kind: input, shape index: {}]   ;;  %s775_s8 = inlined_call_operand.vmem [shape: f32[2,1], index: 8, kind: input, shape index: {}]   ;;  %s776_s9 = inlined_call_operand.hbm [shape: f32[2,128], index: 9, kind: output, shape index: {}]  }
   0x1   :  { %v38_v0 = vld [vmem:[%s769_s2] sm:$0xff]  ;;  %578 = vset.pattern.permute.xlu1 %v609_v2  ;;  %577 = vset.pattern.permute.xlu0 %v609_v2  ;;  %v39_v3 = vld [vmem:[%s769_s2 + $0x8] sm:$0xff] }
   0x2   :  { %v34_v1 = vld [vmem:[%s768_s1] sm:$0xff]  ;;  %72 = vperm.xlu1 %578, %v38_v0   ;;  %v35_v4 = vld [vmem:[%s768_s1 + $0x8] sm:$0xff] }
   0x3   :  { %44 = vperm.xlu0 %577, %v34_v1  }
   0x4   :  { %14 = vsyncpa [#allocation3], 0  ;;  %v37_v5 = vld [vmem:[%s768_s1 + $0x18] sm:$0xff]  ;;  %v610_v6 = vmov 1   ;;  %v36_v7 = vld [vmem:[%s768_s1 + $0x10] sm:$0xff]  ;;  %vm154_vm0 = vcmask 261120   ;;  %v62_v20 = vlaneseq }
   0x5   :  { %v40_v8 = vld [vmem:[%s769_s2 + $0x10] sm:$0xff]  ;;  %v41_v9 = vld [vmem:[%s769_s2 + $0x18] sm:$0xff]  ;;  %v126_v10 = vld [vmem:[%s770_s3] sm:$0xff]  ;;  %vm612_vm1 = vmmov 0   ;;  %s614_s11 = smov [#allocation2]  }
   0x6   :  { %77 = vperm.xlu1 %578, %v39_v3   ;;  %518 = vmatprep.mubr.msk.f32.mxu0 %vm154_vm0, %v126_v10  ;;  %v130_v11 = vld [vmem:[%s771_s4] sm:$0xff]  ;;  %v131_v12 = vld [vmem:[%s771_s4 + $0x8] sm:$0xff]  ;;  %v132_v13 = vld [vmem:[%s771_s4 + $0x10] sm:$0xff]  ;;  %v63_v21 = vshrl.u32 %v62_v20, 7  ;;  %s472_s12 = sshll.u32 %s614_s11, 4  ;;  %s473_s12 = int_to_ptr.vmem [resolvable:$true] %s472_s12 }
   0x7   :  { %49 = vperm.xlu0 %577, %v35_v4   ;;  %v260_v14 = vld [vmem:[%s773_s6] sm:$0xff]  ;;  %v133_v15 = vld [vmem:[%s771_s4 + $0x18] sm:$0xff]  ;;  %v262_v16 = vld [vmem:[%s773_s6 + $0x10] sm:$0xff]  ;;  %s585_s13 = scalar_lea.vmem %s473_s12, 32  ;;  %p590_p1 = scmp.lt.s32.totalorder %s473_s12, %s473_s12 }
   0x8   :  { %v261_v17 = vld [vmem:[%s773_s6 + $0x8] sm:$0xff]  ;;  %v386_v18 = vld [vmem:[%s775_s8] sm:$0x3]  ;;  %v263_v19 = vld [vmem:[%s773_s6 + $0x18] sm:$0xff]  ;;  %v64_v24 = vsub.s32 0, %v63_v21  ;;  %v112_v25 = vsub.s32 1, %v63_v21  ;;  %p586_p0 = scmp.ne.s32.totalorder %s473_s12, %s585_s13  ;;  %p591_p2 = scmp.lt.s32.totalorder %s585_s13, %s585_s13 }
   0x9   :  { %v33_v26 = vld [vmem:[%s767_s0] sm:$0x3]  ;;  %v127_v61 = vld [vmem:[%s770_s3 + $0x8] sm:$0xff]  ;;  %v128_v62 = vld [vmem:[%s770_s3 + $0x10] sm:$0xff] }
   0xa   :  { %579 = vset.pattern.permute.xlu1 %v610_v6  ;;  %v65_v29 = vrot.slane %v33_v26, %v64_v24  ;;  %v113_v30 = vrot.slane %v33_v26, %v112_v25  ;;  %v129_v63 = vld [vmem:[%s770_s3 + $0x18] sm:$0xff]  ;;  %v256_v0 = vld [vmem:[%s772_s5] sm:$0xff]  ;;  %v258_v20 = vld [vmem:[%s772_s5 + $0x10] sm:$0xff]  ;;  %p592_p3 = por %p591_p2, %p590_p1 }
   0xb   :  { %59 = vperm.xlu0 %577, %v37_v5   ;;  %99 = vperm.xlu1 %579, %v35_v4   ;;  %v259_v21 = vld [vmem:[%s772_s5 + $0x18] sm:$0xff] }
   0xc   :  { %532 = vmatprep.mubr.msk.f32.mxu1 %vm154_vm0, %v256_v0  ;;  %p593_p4 = pnand %p592_p3, %p586_p0 }
   0xf   :  { %581 = vset.pattern.permute.xlu0 %v610_v6  ;;  %580 = vset.pattern.permute.xlu1 %v609_v2 }
  0x10   :  { %95 = vperm.xlu0 %581, %v34_v1   ;;  %54 = vperm.xlu1 %580, %v36_v7  }
  0x14   :  { %103 = vperm.xlu0 %581, %v36_v7   ;;  %82 = vperm.xlu1 %580, %v40_v8  }
  0x18   :  { %584 = vset.pattern.permute.xlu0 %v609_v2  ;;  %87 = vperm.xlu1 %580, %v41_v9  }
  0x19   :  { %141 = vperm.xlu0 %584, %v131_v12  }
  0x1c   :  { %582 = vset.pattern.permute.xlu1 %v610_v6 }
  0x1d   :  { %107 = vperm.xlu1 %582, %v37_v5   ;;  %266 = vperm.xlu0 %584, %v260_v14  }
  0x21   :  { %583 = vset.pattern.permute.xlu1 %v609_v2  ;;  %276 = vperm.xlu0 %584, %v262_v16  }
  0x22   :  { %136 = vperm.xlu1 %583, %v130_v11  }
  0x25   :  { %389 = vperm.xlu0 %584, %v386_v18  }
  0x26   :  { %146 = vperm.xlu1 %583, %v132_v13  }
  0x2a   :  { %151 = vperm.xlu1 %583, %v133_v15  }
  0x2e   :  { %271 = vperm.xlu1 %583, %v261_v17  }
  0x32   :  { %281 = vperm.xlu1 %583, %v263_v19   ;;  %v257_v19 = vld [vmem:[%s772_s5 + $0x8] sm:$0xff] }
  0x81   :  { %v73_v22 = vpop.permute.xlu1 %72 }
  0x82   :  { %v45_v23 = vpop.permute.xlu0 %44 }
  0x83   :  { %v66_v34 = vmul.f32 %v65_v29, %v45_v23  ;;  %v613_v23 = vmov 0.0  }
  0x85   :  { %v78_v27 = vpop.permute.xlu1 %77  ;;  %v90_v38 = vadd.f32 %v73_v22, %v66_v34  ;;  %v611_v22 = vmov 0.0|0.0  }
  0x86   :  { %v50_v28 = vpop.permute.xlu0 %49 }
  0x87   :  { %v67_v31 = vmul.f32 %v65_v29, %v50_v28 }
  0x89   :  { %v91_v36 = vadd.f32 %v78_v27, %v67_v31 }
  0x8a   :  { %v60_v32 = vpop.permute.xlu0 %59  ;;  %v100_v33 = vpop.permute.xlu1 %99 }
  0x8b   :  { %v115_v35 = vmul.f32 %v113_v30, %v100_v33  ;;  %v69_v52 = vmul.f32 %v65_v29, %v60_v32 }
  0x8d   :  { %v119_v39 = vadd.f32 %v115_v35, %v91_v36 }
  0x8f   :  { %v96_v37 = vpop.permute.xlu0 %95  ;;  %v55_v41 = vpop.permute.xlu1 %54  ;;  %v123_v43 = vmax.f32 %v119_v39, 0.0 }
  0x90   :  { %v114_v40 = vmul.f32 %v113_v30, %v96_v37  ;;  %v68_v48 = vmul.f32 %v65_v29, %v55_v41 }
  0x92   :  { %v118_v42 = vadd.f32 %v114_v40, %v90_v38 }
  0x93   :  { %v83_v45 = vpop.permute.xlu1 %82  ;;  %v104_v47 = vpop.permute.xlu0 %103 }
  0x94   :  { %v122_v44 = vmax.f32 %v118_v42, 0.0  ;;  %v92_v50 = vadd.f32 %v83_v45, %v68_v48  ;;  %v116_v51 = vmul.f32 %v113_v30, %v104_v47  ;;  %v385_v42 = vld [vmem:[%s774_s7] sm:$0x3] }
  0x96   :  { %v549_v46 = vpack.c.bf16 %v123_v43, %v122_v44  ;;  %v120_v54 = vadd.f32 %v116_v51, %v92_v50 }
  0x97   :  { %v88_v49 = vpop.permute.xlu1 %87 }
  0x98   :  { %550 = vmatprep.subr.bf16.mxu0 %v549_v46  ;;  %v93_v55 = vadd.f32 %v88_v49, %v69_v52  ;;  %v124_v58 = vmax.f32 %v120_v54, 0.0  ;;  %v142_v3 = vpop.permute.xlu0 %141 }
  0x99   :  { %552 = vmatpush3.bf16.msra.mxu0 %v549_v46 }
  0x9c   :  { %v108_v53 = vpop.permute.xlu1 %107  ;;  %v267_v25 = vpop.permute.xlu0 %266 }
  0x9d   :  { %v117_v56 = vmul.f32 %v113_v30, %v108_v53 }
  0x9f   :  { %v121_v57 = vadd.f32 %v117_v56, %v93_v55 }
  0xa0   :  { %v277_v34 = vpop.permute.xlu0 %276 }
  0xa1   :  { %v125_v59 = vmax.f32 %v121_v57, 0.0  ;;  %v137_v1 = vpop.permute.xlu1 %136 }
  0xa3   :  { %v553_v60 = vpack.c.bf16 %v125_v59, %v124_v58 }
  0xa4   :  { %v390_v43 = vpop.permute.xlu0 %389 }
  0xa5   :  { %554 = vmatprep.subr.bf16.mxu0 %v553_v60  ;;  %v147_v2 = vpop.permute.xlu1 %146 }
  0xa6   :  { %556 = vmatpush3.bf16.msra.mxu0 %v553_v60 }
  0xa7   :  { %565 = vmatprep.subr.bf16.mxu0 %v611_v22 }
  0xa9   :  { %519 = vmatmul.mubr.msk.f32.vlgmr.msra.gmra.mrb[0].mxu0 %vm154_vm0, %v127_v61  ;;  %v152_v9 = vpop.permute.xlu1 %151 }
  0xaa   :  { %521 = vmatprep.mubr.msk.f32.mxu0 %vm154_vm0, %v128_v62 }
  0xad   :  { %522 = vmatmul.mubr.msk.f32.gmra.mrb[2].mxu0 %vm154_vm0, %v129_v63  ;;  %v272_v24 = vpop.permute.xlu1 %271 }
  0xae   :  { %546 = vmatprep.mubr.msk.f32.mxu0 %vm612_vm1, %v613_v23 }
  0xb1   :  { %v282_v31 = vpop.permute.xlu1 %281 }
 0x17c   :  { %v520_v4 = vpop.f32.mrb[0].mxu0 }
 0x17d   :  { %v239_v5 = vadd.f32 %v520_v4, %v142_v3  ;;  %v233_v6 = vpop.f32.mrb[1].mxu0 }
 0x17e   :  { %v234_v7 = vadd.f32 %v233_v6, %v137_v1 }
 0x17f   :  { %v253_v8 = vmax.f32 %v239_v5, 0.0 }
 0x180   :  { %v252_v10 = vmax.f32 %v234_v7, 0.0  ;;  %v523_v11 = vpop.f32.mrb[2].mxu0 }
 0x181   :  { %v249_v12 = vadd.f32 %v523_v11, %v152_v9  ;;  %v243_v13 = vpop.f32.mrb[3].mxu0 }
 0x182   :  { %v244_v14 = vadd.f32 %v243_v13, %v147_v2  ;;  %v557_v15 = vpack.c.bf16 %v253_v8, %v252_v10 }
 0x183   :  { %v255_v16 = vmax.f32 %v249_v12, 0.0 }
 0x184   :  { %v254_v17 = vmax.f32 %v244_v14, 0.0  ;;  %558 = vmatprep.subr.bf16.mxu1 %v557_v15 }
 0x185   :  { %560 = vmatpush3.bf16.msra.mxu1 %v557_v15 }
 0x186   :  { %v561_v18 = vpack.c.bf16 %v255_v16, %v254_v17 }
 0x188   :  { %562 = vmatprep.subr.bf16.mxu1 %v561_v18 }
 0x189   :  { %564 = vmatpush3.bf16.msra.mxu1 %v561_v18 }
 0x18c   :  { %533 = vmatmul.mubr.msk.f32.vlgmr.msra.gmra.mrb[0].mxu1 %vm154_vm0, %v257_v19 }
 0x18d   :  { %535 = vmatprep.mubr.msk.f32.mxu1 %vm154_vm0, %v258_v20 }
 0x190   :  { %536 = vmatmul.mubr.msk.f32.gmra.mrb[2].mxu1 %vm154_vm0, %v259_v21 }
 0x25f   :  { %v534_v26 = vpop.f32.mrb[0].mxu1 }
 0x260   :  { %v368_v27 = vadd.f32 %v534_v26, %v272_v24  ;;  %v362_v28 = vpop.f32.mrb[1].mxu1 }
 0x261   :  { %v363_v29 = vadd.f32 %v362_v28, %v267_v25 }
 0x262   :  { %v382_v30 = vmax.f32 %v368_v27, 0.0 }
 0x263   :  { %v381_v32 = vmax.f32 %v363_v29, 0.0  ;;  %v537_v33 = vpop.f32.mrb[2].mxu1 }
 0x264   :  { %v378_v35 = vadd.f32 %v537_v33, %v282_v31  ;;  %v372_v36 = vpop.f32.mrb[3].mxu1 }
 0x265   :  { %v566_v37 = vpack.c.bf16 %v382_v30, %v381_v32  ;;  %v373_v38 = vadd.f32 %v372_v36, %v277_v34 }
 0x266   :  { %v384_v39 = vmax.f32 %v378_v35, 0.0 }
 0x267   :  { %v383_v40 = vmax.f32 %v373_v38, 0.0  ;;  %567 = vmatpush3.bf16.msra.mxu0 %v566_v37 }
 0x268   :  { %568 = vmatprep.subr.bf16.mxu0 %v611_v22 }
 0x269   :  { %v569_v41 = vpack.c.bf16 %v384_v39, %v383_v40 }
 0x26b   :  { %570 = vmatpush3.bf16.msra.mxu0 %v569_v41 }
 0x26e   :  { %547 = vmatmul.mubr.msk.f32.vlgmr.msra.gmra.mrb[4].mxu0 %vm154_vm0, %v385_v42 }
 0x341   :  { %v461_v44 = vpop.f32.mrb[4].mxu0 }
 0x342   :  { %v462_v45 = vadd.f32 %v461_v44, %v390_v43  ;;  %v548_v46 = vpop.f32.mrb[5].mxu0 }
 0x344   :  { %465 = vst [vmem:[#allocation2] sm:$0x3] %v462_v45 }
 0x345   :  { %596 = shalt.err (!%p593_p4)
}
 0x346   :  { %s597_s7 = scalar_lea.hbm %s776_s9, 32 }
 0x347   :  { %p598_p5 = scmp.ne.s32.totalorder %s776_s9, %s597_s7  ;;  %p601_p6 = scmp.lt.u32.totalorder %s597_s7, %s776_s9 }
 0x349   :  { %p603_p7 = pnand %p601_p6, %p598_p5 }
 0x34b   :  { %606 = shalt.err (!%p603_p7)
}
 0x34c   :  { %475 = dma.vmem_to_hbm [thread:$0]  %s473_s12, 32, %s776_s9, [#allocation3]  }
 0x34d   :  { %607 = dma.done.wait [#allocation3], 32  }
 0x34e   :  { %608 = vsyncadd [#allocation3], 4294967264 }
 0x34f   :  { %479 = vsyncpa [#allocation3], 1 }

</bundles_post_ra>
